<compile_context>
chip_gen: v7x
topology: tpu7x:2x2x1
jax: 0.10.0
libtpu: 0.0.40
codegen_flags: <defaults>
</compile_context>

<pallas_src>
import functools

import jax
import jax.numpy as jnp
from jax.experimental import pallas as pl
from jax.experimental.pallas import tpu as pltpu  # noqa: F401  (kept for parity)


def drqn_kernel(x_ref, wih_ref, whh_ref, b_ref, w1_ref, b1_ref, w2_ref, b2_ref,
                out_ref, *, batch, time):
    """Single-invocation DRQN forward (time-major 2D I/O).

    x_ref  : (T*B, D)   time-major input rows (row = t*B + b)
    wih_ref: (D, 4H)    LSTM input weights (transposed; g-gate cols prescaled by 2)
    whh_ref: (H, 4H)    LSTM recurrent weights (transposed; g-gate cols prescaled)
    b_ref  : (1, 4H)    combined LSTM bias (b_ih + b_hh; g-gate cols prescaled)
    w1_ref : (H, F1)    fc1 weight (transposed), b1_ref: (1, F1)
    w2_ref : (F1, A)    fc2 weight (transposed), b2_ref: (1, A)
    out_ref: (T*B, A)   Q-values, time-major rows
    """
    B, T = batch, time
    H = whh_ref.shape[0]

    # ---- hoisted input projection: one matmul for the whole sequence -------
    gx = jnp.dot(x_ref[...], wih_ref[...],
                 preferred_element_type=jnp.float32) + b_ref[...]     # (T*B, 4H)

    # ---- serial LSTM recurrence, statically unrolled, all state in vregs ---
    whh = whh_ref[...]                                                # (H, 4H)
    h = jnp.zeros((B, H), jnp.float32)
    c = jnp.zeros((B, H), jnp.float32)
    hs = []
    for t in range(T):  # static unroll: LLO scheduler sees the whole chain
        gates = gx[t * B:(t + 1) * B, :] + jnp.dot(
            h, whh, preferred_element_type=jnp.float32)               # (B, 4H)
        sig = jax.nn.sigmoid(gates)          # single EUP slab pass per step
        i_g = sig[:, 0 * H:1 * H]
        f_g = sig[:, 1 * H:2 * H]
        g_g = 2.0 * sig[:, 2 * H:3 * H] - 1.0   # tanh(z) = 2*sigmoid(2z) - 1
        o_g = sig[:, 3 * H:4 * H]
        c = f_g * c + i_g * g_g
        h = o_g * jnp.tanh(c)                # second (last) EUP pass per step
        hs.append(h)

    # ---- hoisted fc1 -> relu -> fc2 head, single dense output store --------
    hs_all = jnp.concatenate(hs, axis=0)                              # (T*B, H)
    y1 = jnp.dot(hs_all, w1_ref[...],
                 preferred_element_type=jnp.float32) + b1_ref[...]
    y1 = jnp.maximum(y1, 0.0)
    q = jnp.dot(y1, w2_ref[...],
                preferred_element_type=jnp.float32) + b2_ref[...]     # (T*B, A)
    out_ref[...] = q.astype(out_ref.dtype)


def prepare_params(w_ih, w_hh, b_ih, b_hh, w1, b1, w2, b2):
    """One-time weight preprocessing (run once, outside the jitted forward).

    Transposes weights for MXU-friendly layouts, folds b_ih + b_hh, and
    pre-scales the g-gate (cell candidate) rows by 2 so the kernel can use a
    single sigmoid pass per step (tanh(z) = 2*sigmoid(2z) - 1).
    """
    H = w_hh.shape[1]
    gate_scale = jnp.concatenate([
        jnp.ones((2 * H,), jnp.float32),          # i, f gates
        2.0 * jnp.ones((H,), jnp.float32),        # g gate (pre-scale by 2)
        jnp.ones((H,), jnp.float32),              # o gate
    ])
    wih_t = (w_ih.astype(jnp.float32) * gate_scale[:, None]).T        # (D, 4H)
    whh_t = (w_hh.astype(jnp.float32) * gate_scale[:, None]).T        # (H, 4H)
    b = ((b_ih + b_hh).astype(jnp.float32) * gate_scale).reshape(1, 4 * H)
    w1_t = jnp.transpose(w1).astype(jnp.float32)                      # (H, F1)
    b1_r = b1.reshape(1, -1).astype(jnp.float32)
    w2_t = jnp.transpose(w2).astype(jnp.float32)                      # (F1, A)
    b2_r = b2.reshape(1, -1).astype(jnp.float32)
    return wih_t, whh_t, b, w1_t, b1_r, w2_t, b2_r


@jax.jit
def drqn_forward(state, wih_t, whh_t, b, w1_t, b1_r, w2_t, b2_r):
    """state: (B, T, D) batch_first, like the PyTorch module. Returns (B, T, A)."""
    B, T, D = state.shape
    A = w2_t.shape[1]

    # Time-major 2D input (tiny transpose: ~1 KiB) so the kernel's per-step
    # gate slice is a contiguous leading-dim block in vregs.
    x_tm = jnp.transpose(state, (1, 0, 2)).reshape(T * B, D).astype(jnp.float32)

    # No grid: single kernel invocation, every operand resident in VMEM
    # (full-array blocks by default); one dense output store.
    q_tm = pl.pallas_call(
        functools.partial(drqn_kernel, batch=B, time=T),
        out_shape=jax.ShapeDtypeStruct((T * B, A), jnp.float32),
    )(x_tm, wih_t, whh_t, b, w1_t, b1_r, w2_t, b2_r)

    return jnp.transpose(q_tm.reshape(T, B, A), (1, 0, 2))            # (B, T, A)


def drqn_reference(state, w_ih, w_hh, b_ih, b_hh, w1, b1, w2, b2):
    """Pure-JAX reference matching torch.nn.LSTM(batch_first=True) + fc head."""
    B, T, D = state.shape
    H = w_hh.shape[1]
    b = b_ih + b_hh

    def step(carry, x_t):
        h, c = carry
        gates = x_t @ w_ih.T + h @ w_hh.T + b
        i = jax.nn.sigmoid(gates[:, 0 * H:1 * H])
        f = jax.nn.sigmoid(gates[:, 1 * H:2 * H])
        g = jnp.tanh(gates[:, 2 * H:3 * H])
        o = jax.nn.sigmoid(gates[:, 3 * H:4 * H])
        c = f * c + i * g
        h = o * jnp.tanh(c)
        return (h, c), h

    h0 = jnp.zeros((B, H), jnp.float32)
    c0 = jnp.zeros((B, H), jnp.float32)
    _, hs = jax.lax.scan(step, (h0, c0), jnp.transpose(state, (1, 0, 2)))
    hs = jnp.transpose(hs, (1, 0, 2))                                 # (B, T, H)
    y = jnp.maximum(hs @ w1.T + b1, 0.0)
    return y @ w2.T + b2


if __name__ == "__main__":
    # Small shapes consistent with DRQN(observation_dim=16, action_dim=4,
    # time_step=8, hidden_num=32); fc1 width stays 128 as in the module.
    B, T, D, H, F1, A = 2, 8, 16, 32, 128, 4

    key = jax.random.PRNGKey(0)
    ks = jax.random.split(key, 8)
    scale = 1.0 / jnp.sqrt(H)

    state = jax.random.normal(ks[0], (B, T, D), jnp.float32)
    w_ih = jax.random.uniform(ks[1], (4 * H, D), jnp.float32, -scale, scale)
    w_hh = jax.random.uniform(ks[2], (4 * H, H), jnp.float32, -scale, scale)
    b_ih = jax.random.uniform(ks[3], (4 * H,), jnp.float32, -scale, scale)
    b_hh = jax.random.uniform(ks[4], (4 * H,), jnp.float32, -scale, scale)
    w1 = jax.random.uniform(ks[5], (F1, H), jnp.float32, -scale, scale)
    b1 = jax.random.uniform(ks[6], (F1,), jnp.float32, -scale, scale)
    w2 = jax.random.uniform(ks[7], (A, F1), jnp.float32, -1.0 / jnp.sqrt(F1),
                            1.0 / jnp.sqrt(F1))
    b2 = jnp.zeros((A,), jnp.float32)

    # One-time weight prep (static at inference), outside the per-call path.
    params = prepare_params(w_ih, w_hh, b_ih, b_hh, w1, b1, w2, b2)

    out = drqn_forward(state, *params)
    out = jax.block_until_ready(out)

    ref = drqn_reference(state, w_ih, w_hh, b_ih, b_hh, w1, b1, w2, b2)
    assert out.shape == (B, T, A), out.shape
    assert jnp.allclose(out, ref, atol=1e-5, rtol=1e-5), \
        float(jnp.max(jnp.abs(out - ref)))

    print("KERNEL_OK")
</pallas_src>

<mosaic_0001>
module attributes {stable_mosaic.version = 11 : i64} {
  func.func @drqn_kernel(%arg0: memref<16x16xf32, #tpu.memory_space<vmem>>, %arg1: memref<16x128xf32, #tpu.memory_space<vmem>>, %arg2: memref<32x128xf32, #tpu.memory_space<vmem>>, %arg3: memref<1x128xf32, #tpu.memory_space<vmem>>, %arg4: memref<32x128xf32, #tpu.memory_space<vmem>>, %arg5: memref<1x128xf32, #tpu.memory_space<vmem>>, %arg6: memref<128x4xf32, #tpu.memory_space<vmem>>, %arg7: memref<1x4xf32, #tpu.memory_space<vmem>>, %arg8: memref<16x4xf32, #tpu.memory_space<vmem>>) attributes {dimension_semantics = [], scalar_prefetch = 0 : i64, scratch_operands = 0 : i64, tpu.core_type = #tpu.core_type<tc>} {
    %c0 = arith.constant 0 : index
    %c0_0 = arith.constant 0 : index
    %0 = vector.load %arg0[%c0, %c0_0] : memref<16x16xf32, #tpu.memory_space<vmem>>, vector<16x16xf32>
    %c0_1 = arith.constant 0 : index
    %c0_2 = arith.constant 0 : index
    %1 = vector.load %arg1[%c0_1, %c0_2] : memref<16x128xf32, #tpu.memory_space<vmem>>, vector<16x128xf32>
    %cst = arith.constant dense<0.000000e+00> : vector<16x128xf32>
    %2 = tpu.matmul %0, %1, %cst {dimension_numbers = #tpu.dot_dimension_numbers<[1], [0], [0], [1], [0, 0, 1, 1], [], []>} : vector<16x16xf32>, vector<16x128xf32>, vector<16x128xf32> -> vector<16x128xf32>
    %c0_3 = arith.constant 0 : index
    %c0_4 = arith.constant 0 : index
    %3 = vector.load %arg3[%c0_3, %c0_4] : memref<1x128xf32, #tpu.memory_space<vmem>>, vector<1x128xf32>
    %4 = vector.broadcast %3 : vector<1x128xf32> to vector<16x128xf32>
    %5 = arith.addf %2, %4 : vector<16x128xf32>
    %c0_5 = arith.constant 0 : index
    %c0_6 = arith.constant 0 : index
    %6 = vector.load %arg2[%c0_5, %c0_6] : memref<32x128xf32, #tpu.memory_space<vmem>>, vector<32x128xf32>
    %cst_7 = arith.constant 0.000000e+00 : f32
    %7 = vector.broadcast %cst_7 : f32 to vector<2x32xf32>
    %cst_8 = arith.constant 0.000000e+00 : f32
    %8 = vector.broadcast %cst_8 : f32 to vector<2x32xf32>
    %9 = vector.extract_strided_slice %5 {offsets = [0, 0], sizes = [2, 128], strides = [1, 1]} : vector<16x128xf32> to vector<2x128xf32>
    %cst_9 = arith.constant dense<0.000000e+00> : vector<2x128xf32>
    %10 = tpu.matmul %7, %6, %cst_9 {dimension_numbers = #tpu.dot_dimension_numbers<[1], [0], [0], [1], [0, 0, 1, 1], [], []>} : vector<2x32xf32>, vector<32x128xf32>, vector<2x128xf32> -> vector<2x128xf32>
    %11 = arith.addf %9, %10 : vector<2x128xf32>
    %12 = arith.negf %11 : vector<2x128xf32>
    %13 = math.exp %12 : vector<2x128xf32>
    %cst_10 = arith.constant 1.000000e+00 : f32
    %14 = vector.broadcast %cst_10 : f32 to vector<2x128xf32>
    %15 = arith.addf %14, %13 : vector<2x128xf32>
    %16 = arith.divf %14, %15 : vector<2x128xf32>
    %17 = vector.extract_strided_slice %16 {offsets = [0, 0], sizes = [2, 32], strides = [1, 1]} : vector<2x128xf32> to vector<2x32xf32>
    %18 = vector.extract_strided_slice %16 {offsets = [0, 32], sizes = [2, 32], strides = [1, 1]} : vector<2x128xf32> to vector<2x32xf32>
    %19 = vector.extract_strided_slice %16 {offsets = [0, 64], sizes = [2, 32], strides = [1, 1]} : vector<2x128xf32> to vector<2x32xf32>
    %cst_11 = arith.constant 2.000000e+00 : f32
    %20 = vector.broadcast %cst_11 : f32 to vector<2x32xf32>
    %21 = arith.mulf %20, %19 : vector<2x32xf32>
    %cst_12 = arith.constant 1.000000e+00 : f32
    %22 = vector.broadcast %cst_12 : f32 to vector<2x32xf32>
    %23 = arith.subf %21, %22 : vector<2x32xf32>
    %24 = vector.extract_strided_slice %16 {offsets = [0, 96], sizes = [2, 32], strides = [1, 1]} : vector<2x128xf32> to vector<2x32xf32>
    %25 = arith.mulf %18, %8 : vector<2x32xf32>
    %26 = arith.mulf %17, %23 : vector<2x32xf32>
    %27 = arith.addf %25, %26 : vector<2x32xf32>
    %28 = math.tanh %27 : vector<2x32xf32>
    %29 = arith.mulf %24, %28 : vector<2x32xf32>
    %30 = vector.extract_strided_slice %5 {offsets = [2, 0], sizes = [2, 128], strides = [1, 1]} : vector<16x128xf32> to vector<2x128xf32>
    %cst_13 = arith.constant dense<0.000000e+00> : vector<2x128xf32>
    %31 = tpu.matmul %29, %6, %cst_13 {dimension_numbers = #tpu.dot_dimension_numbers<[1], [0], [0], [1], [0, 0, 1, 1], [], []>} : vector<2x32xf32>, vector<32x128xf32>, vector<2x128xf32> -> vector<2x128xf32>
    %32 = arith.addf %30, %31 : vector<2x128xf32>
    %33 = arith.negf %32 : vector<2x128xf32>
    %34 = math.exp %33 : vector<2x128xf32>
    %cst_14 = arith.constant 1.000000e+00 : f32
    %35 = vector.broadcast %cst_14 : f32 to vector<2x128xf32>
    %36 = arith.addf %35, %34 : vector<2x128xf32>
    %37 = arith.divf %35, %36 : vector<2x128xf32>
    %38 = vector.extract_strided_slice %37 {offsets = [0, 0], sizes = [2, 32], strides = [1, 1]} : vector<2x128xf32> to vector<2x32xf32>
    %39 = vector.extract_strided_slice %37 {offsets = [0, 32], sizes = [2, 32], strides = [1, 1]} : vector<2x128xf32> to vector<2x32xf32>
    %40 = vector.extract_strided_slice %37 {offsets = [0, 64], sizes = [2, 32], strides = [1, 1]} : vector<2x128xf32> to vector<2x32xf32>
    %cst_15 = arith.constant 2.000000e+00 : f32
    %41 = vector.broadcast %cst_15 : f32 to vector<2x32xf32>
    %42 = arith.mulf %41, %40 : vector<2x32xf32>
    %cst_16 = arith.constant 1.000000e+00 : f32
    %43 = vector.broadcast %cst_16 : f32 to vector<2x32xf32>
    %44 = arith.subf %42, %43 : vector<2x32xf32>
    %45 = vector.extract_strided_slice %37 {offsets = [0, 96], sizes = [2, 32], strides = [1, 1]} : vector<2x128xf32> to vector<2x32xf32>
    %46 = arith.mulf %39, %27 : vector<2x32xf32>
    %47 = arith.mulf %38, %44 : vector<2x32xf32>
    %48 = arith.addf %46, %47 : vector<2x32xf32>
    %49 = math.tanh %48 : vector<2x32xf32>
    %50 = arith.mulf %45, %49 : vector<2x32xf32>
    %51 = vector.extract_strided_slice %5 {offsets = [4, 0], sizes = [2, 128], strides = [1, 1]} : vector<16x128xf32> to vector<2x128xf32>
    %cst_17 = arith.constant dense<0.000000e+00> : vector<2x128xf32>
    %52 = tpu.matmul %50, %6, %cst_17 {dimension_numbers = #tpu.dot_dimension_numbers<[1], [0], [0], [1], [0, 0, 1, 1], [], []>} : vector<2x32xf32>, vector<32x128xf32>, vector<2x128xf32> -> vector<2x128xf32>
    %53 = arith.addf %51, %52 : vector<2x128xf32>
    %54 = arith.negf %53 : vector<2x128xf32>
    %55 = math.exp %54 : vector<2x128xf32>
    %cst_18 = arith.constant 1.000000e+00 : f32
    %56 = vector.broadcast %cst_18 : f32 to vector<2x128xf32>
    %57 = arith.addf %56, %55 : vector<2x128xf32>
    %58 = arith.divf %56, %57 : vector<2x128xf32>
    %59 = vector.extract_strided_slice %58 {offsets = [0, 0], sizes = [2, 32], strides = [1, 1]} : vector<2x128xf32> to vector<2x32xf32>
    %60 = vector.extract_strided_slice %58 {offsets = [0, 32], sizes = [2, 32], strides = [1, 1]} : vector<2x128xf32> to vector<2x32xf32>
    %61 = vector.extract_strided_slice %58 {offsets = [0, 64], sizes = [2, 32], strides = [1, 1]} : vector<2x128xf32> to vector<2x32xf32>
    %cst_19 = arith.constant 2.000000e+00 : f32
    %62 = vector.broadcast %cst_19 : f32 to vector<2x32xf32>
    %63 = arith.mulf %62, %61 : vector<2x32xf32>
    %cst_20 = arith.constant 1.000000e+00 : f32
    %64 = vector.broadcast %cst_20 : f32 to vector<2x32xf32>
    %65 = arith.subf %63, %64 : vector<2x32xf32>
    %66 = vector.extract_strided_slice %58 {offsets = [0, 96], sizes = [2, 32], strides = [1, 1]} : vector<2x128xf32> to vector<2x32xf32>
    %67 = arith.mulf %60, %48 : vector<2x32xf32>
    %68 = arith.mulf %59, %65 : vector<2x32xf32>
    %69 = arith.addf %67, %68 : vector<2x32xf32>
    %70 = math.tanh %69 : vector<2x32xf32>
    %71 = arith.mulf %66, %70 : vector<2x32xf32>
    %72 = vector.extract_strided_slice %5 {offsets = [6, 0], sizes = [2, 128], strides = [1, 1]} : vector<16x128xf32> to vector<2x128xf32>
    %cst_21 = arith.constant dense<0.000000e+00> : vector<2x128xf32>
    %73 = tpu.matmul %71, %6, %cst_21 {dimension_numbers = #tpu.dot_dimension_numbers<[1], [0], [0], [1], [0, 0, 1, 1], [], []>} : vector<2x32xf32>, vector<32x128xf32>, vector<2x128xf32> -> vector<2x128xf32>
    %74 = arith.addf %72, %73 : vector<2x128xf32>
    %75 = arith.negf %74 : vector<2x128xf32>
    %76 = math.exp %75 : vector<2x128xf32>
    %cst_22 = arith.constant 1.000000e+00 : f32
    %77 = vector.broadcast %cst_22 : f32 to vector<2x128xf32>
    %78 = arith.addf %77, %76 : vector<2x128xf32>
    %79 = arith.divf %77, %78 : vector<2x128xf32>
    %80 = vector.extract_strided_slice %79 {offsets = [0, 0], sizes = [2, 32], strides = [1, 1]} : vector<2x128xf32> to vector<2x32xf32>
    %81 = vector.extract_strided_slice %79 {offsets = [0, 32], sizes = [2, 32], strides = [1, 1]} : vector<2x128xf32> to vector<2x32xf32>
    %82 = vector.extract_strided_slice %79 {offsets = [0, 64], sizes = [2, 32], strides = [1, 1]} : vector<2x128xf32> to vector<2x32xf32>
    %cst_23 = arith.constant 2.000000e+00 : f32
    %83 = vector.broadcast %cst_23 : f32 to vector<2x32xf32>
    %84 = arith.mulf %83, %82 : vector<2x32xf32>
    %cst_24 = arith.constant 1.000000e+00 : f32
    %85 = vector.broadcast %cst_24 : f32 to vector<2x32xf32>
    %86 = arith.subf %84, %85 : vector<2x32xf32>
    %87 = vector.extract_strided_slice %79 {offsets = [0, 96], sizes = [2, 32], strides = [1, 1]} : vector<2x128xf32> to vector<2x32xf32>
    %88 = arith.mulf %81, %69 : vector<2x32xf32>
    %89 = arith.mulf %80, %86 : vector<2x32xf32>
    %90 = arith.addf %88, %89 : vector<2x32xf32>
    %91 = math.tanh %90 : vector<2x32xf32>
    %92 = arith.mulf %87, %91 : vector<2x32xf32>
    %93 = vector.extract_strided_slice %5 {offsets = [8, 0], sizes = [2, 128], strides = [1, 1]} : vector<16x128xf32> to vector<2x128xf32>
    %cst_25 = arith.constant dense<0.000000e+00> : vector<2x128xf32>
    %94 = tpu.matmul %92, %6, %cst_25 {dimension_numbers = #tpu.dot_dimension_numbers<[1], [0], [0], [1], [0, 0, 1, 1], [], []>} : vector<2x32xf32>, vector<32x128xf32>, vector<2x128xf32> -> vector<2x128xf32>
    %95 = arith.addf %93, %94 : vector<2x128xf32>
    %96 = arith.negf %95 : vector<2x128xf32>
    %97 = math.exp %96 : vector<2x128xf32>
    %cst_26 = arith.constant 1.000000e+00 : f32
    %98 = vector.broadcast %cst_26 : f32 to vector<2x128xf32>
    %99 = arith.addf %98, %97 : vector<2x128xf32>
    %100 = arith.divf %98, %99 : vector<2x128xf32>
    %101 = vector.extract_strided_slice %100 {offsets = [0, 0], sizes = [2, 32], strides = [1, 1]} : vector<2x128xf32> to vector<2x32xf32>
    %102 = vector.extract_strided_slice %100 {offsets = [0, 32], sizes = [2, 32], strides = [1, 1]} : vector<2x128xf32> to vector<2x32xf32>
    %103 = vector.extract_strided_slice %100 {offsets = [0, 64], sizes = [2, 32], strides = [1, 1]} : vector<2x128xf32> to vector<2x32xf32>
    %cst_27 = arith.constant 2.000000e+00 : f32
    %104 = vector.broadcast %cst_27 : f32 to vector<2x32xf32>
    %105 = arith.mulf %104, %103 : vector<2x32xf32>
    %cst_28 = arith.constant 1.000000e+00 : f32
    %106 = vector.broadcast %cst_28 : f32 to vector<2x32xf32>
    %107 = arith.subf %105, %106 : vector<2x32xf32>
    %108 = vector.extract_strided_slice %100 {offsets = [0, 96], sizes = [2, 32], strides = [1, 1]} : vector<2x128xf32> to vector<2x32xf32>
    %109 = arith.mulf %102, %90 : vector<2x32xf32>
    %110 = arith.mulf %101, %107 : vector<2x32xf32>
    %111 = arith.addf %109, %110 : vector<2x32xf32>
    %112 = math.tanh %111 : vector<2x32xf32>
    %113 = arith.mulf %108, %112 : vector<2x32xf32>
    %114 = vector.extract_strided_slice %5 {offsets = [10, 0], sizes = [2, 128], strides = [1, 1]} : vector<16x128xf32> to vector<2x128xf32>
    %cst_29 = arith.constant dense<0.000000e+00> : vector<2x128xf32>
    %115 = tpu.matmul %113, %6, %cst_29 {dimension_numbers = #tpu.dot_dimension_numbers<[1], [0], [0], [1], [0, 0, 1, 1], [], []>} : vector<2x32xf32>, vector<32x128xf32>, vector<2x128xf32> -> vector<2x128xf32>
    %116 = arith.addf %114, %115 : vector<2x128xf32>
    %117 = arith.negf %116 : vector<2x128xf32>
    %118 = math.exp %117 : vector<2x128xf32>
    %cst_30 = arith.constant 1.000000e+00 : f32
    %119 = vector.broadcast %cst_30 : f32 to vector<2x128xf32>
    %120 = arith.addf %119, %118 : vector<2x128xf32>
    %121 = arith.divf %119, %120 : vector<2x128xf32>
    %122 = vector.extract_strided_slice %121 {offsets = [0, 0], sizes = [2, 32], strides = [1, 1]} : vector<2x128xf32> to vector<2x32xf32>
    %123 = vector.extract_strided_slice %121 {offsets = [0, 32], sizes = [2, 32], strides = [1, 1]} : vector<2x128xf32> to vector<2x32xf32>
    %124 = vector.extract_strided_slice %121 {offsets = [0, 64], sizes = [2, 32], strides = [1, 1]} : vector<2x128xf32> to vector<2x32xf32>
    %cst_31 = arith.constant 2.000000e+00 : f32
    %125 = vector.broadcast %cst_31 : f32 to vector<2x32xf32>
    %126 = arith.mulf %125, %124 : vector<2x32xf32>
    %cst_32 = arith.constant 1.000000e+00 : f32
    %127 = vector.broadcast %cst_32 : f32 to vector<2x32xf32>
    %128 = arith.subf %126, %127 : vector<2x32xf32>
    %129 = vector.extract_strided_slice %121 {offsets = [0, 96], sizes = [2, 32], strides = [1, 1]} : vector<2x128xf32> to vector<2x32xf32>
    %130 = arith.mulf %123, %111 : vector<2x32xf32>
    %131 = arith.mulf %122, %128 : vector<2x32xf32>
    %132 = arith.addf %130, %131 : vector<2x32xf32>
    %133 = math.tanh %132 : vector<2x32xf32>
    %134 = arith.mulf %129, %133 : vector<2x32xf32>
    %135 = vector.extract_strided_slice %5 {offsets = [12, 0], sizes = [2, 128], strides = [1, 1]} : vector<16x128xf32> to vector<2x128xf32>
    %cst_33 = arith.constant dense<0.000000e+00> : vector<2x128xf32>
    %136 = tpu.matmul %134, %6, %cst_33 {dimension_numbers = #tpu.dot_dimension_numbers<[1], [0], [0], [1], [0, 0, 1, 1], [], []>} : vector<2x32xf32>, vector<32x128xf32>, vector<2x128xf32> -> vector<2x128xf32>
    %137 = arith.addf %135, %136 : vector<2x128xf32>
    %138 = arith.negf %137 : vector<2x128xf32>
    %139 = math.exp %138 : vector<2x128xf32>
    %cst_34 = arith.constant 1.000000e+00 : f32
    %140 = vector.broadcast %cst_34 : f32 to vector<2x128xf32>
    %141 = arith.addf %140, %139 : vector<2x128xf32>
    %142 = arith.divf %140, %141 : vector<2x128xf32>
    %143 = vector.extract_strided_slice %142 {offsets = [0, 0], sizes = [2, 32], strides = [1, 1]} : vector<2x128xf32> to vector<2x32xf32>
    %144 = vector.extract_strided_slice %142 {offsets = [0, 32], sizes = [2, 32], strides = [1, 1]} : vector<2x128xf32> to vector<2x32xf32>
    %145 = vector.extract_strided_slice %142 {offsets = [0, 64], sizes = [2, 32], strides = [1, 1]} : vector<2x128xf32> to vector<2x32xf32>
    %cst_35 = arith.constant 2.000000e+00 : f32
    %146 = vector.broadcast %cst_35 : f32 to vector<2x32xf32>
    %147 = arith.mulf %146, %145 : vector<2x32xf32>
    %cst_36 = arith.constant 1.000000e+00 : f32
    %148 = vector.broadcast %cst_36 : f32 to vector<2x32xf32>
    %149 = arith.subf %147, %148 : vector<2x32xf32>
    %150 = vector.extract_strided_slice %142 {offsets = [0, 96], sizes = [2, 32], strides = [1, 1]} : vector<2x128xf32> to vector<2x32xf32>
    %151 = arith.mulf %144, %132 : vector<2x32xf32>
    %152 = arith.mulf %143, %149 : vector<2x32xf32>
    %153 = arith.addf %151, %152 : vector<2x32xf32>
    %154 = math.tanh %153 : vector<2x32xf32>
    %155 = arith.mulf %150, %154 : vector<2x32xf32>
    %156 = vector.extract_strided_slice %5 {offsets = [14, 0], sizes = [2, 128], strides = [1, 1]} : vector<16x128xf32> to vector<2x128xf32>
    %cst_37 = arith.constant dense<0.000000e+00> : vector<2x128xf32>
    %157 = tpu.matmul %155, %6, %cst_37 {dimension_numbers = #tpu.dot_dimension_numbers<[1], [0], [0], [1], [0, 0, 1, 1], [], []>} : vector<2x32xf32>, vector<32x128xf32>, vector<2x128xf32> -> vector<2x128xf32>
    %158 = arith.addf %156, %157 : vector<2x128xf32>
    %159 = arith.negf %158 : vector<2x128xf32>
    %160 = math.exp %159 : vector<2x128xf32>
    %cst_38 = arith.constant 1.000000e+00 : f32
    %161 = vector.broadcast %cst_38 : f32 to vector<2x128xf32>
    %162 = arith.addf %161, %160 : vector<2x128xf32>
    %163 = arith.divf %161, %162 : vector<2x128xf32>
    %164 = vector.extract_strided_slice %163 {offsets = [0, 0], sizes = [2, 32], strides = [1, 1]} : vector<2x128xf32> to vector<2x32xf32>
    %165 = vector.extract_strided_slice %163 {offsets = [0, 32], sizes = [2, 32], strides = [1, 1]} : vector<2x128xf32> to vector<2x32xf32>
    %166 = vector.extract_strided_slice %163 {offsets = [0, 64], sizes = [2, 32], strides = [1, 1]} : vector<2x128xf32> to vector<2x32xf32>
    %cst_39 = arith.constant 2.000000e+00 : f32
    %167 = vector.broadcast %cst_39 : f32 to vector<2x32xf32>
    %168 = arith.mulf %167, %166 : vector<2x32xf32>
    %cst_40 = arith.constant 1.000000e+00 : f32
    %169 = vector.broadcast %cst_40 : f32 to vector<2x32xf32>
    %170 = arith.subf %168, %169 : vector<2x32xf32>
    %171 = vector.extract_strided_slice %163 {offsets = [0, 96], sizes = [2, 32], strides = [1, 1]} : vector<2x128xf32> to vector<2x32xf32>
    %172 = arith.mulf %165, %153 : vector<2x32xf32>
    %173 = arith.mulf %164, %170 : vector<2x32xf32>
    %174 = arith.addf %172, %173 : vector<2x32xf32>
    %175 = math.tanh %174 : vector<2x32xf32>
    %176 = arith.mulf %171, %175 : vector<2x32xf32>
    %177 = tpu.concatenate %29, %50, %71, %92, %113, %134, %155, %176 in 0 : vector<2x32xf32>, vector<2x32xf32>, vector<2x32xf32>, vector<2x32xf32>, vector<2x32xf32>, vector<2x32xf32>, vector<2x32xf32>, vector<2x32xf32> -> vector<16x32xf32>
    %c0_41 = arith.constant 0 : index
    %c0_42 = arith.constant 0 : index
    %178 = vector.load %arg4[%c0_41, %c0_42] : memref<32x128xf32, #tpu.memory_space<vmem>>, vector<32x128xf32>
    %cst_43 = arith.constant dense<0.000000e+00> : vector<16x128xf32>
    %179 = tpu.matmul %177, %178, %cst_43 {dimension_numbers = #tpu.dot_dimension_numbers<[1], [0], [0], [1], [0, 0, 1, 1], [], []>} : vector<16x32xf32>, vector<32x128xf32>, vector<16x128xf32> -> vector<16x128xf32>
    %c0_44 = arith.constant 0 : index
    %c0_45 = arith.constant 0 : index
    %180 = vector.load %arg5[%c0_44, %c0_45] : memref<1x128xf32, #tpu.memory_space<vmem>>, vector<1x128xf32>
    %181 = vector.broadcast %180 : vector<1x128xf32> to vector<16x128xf32>
    %182 = arith.addf %179, %181 : vector<16x128xf32>
    %cst_46 = arith.constant 0.000000e+00 : f32
    %183 = vector.broadcast %cst_46 : f32 to vector<16x128xf32>
    %184 = arith.maximumf %182, %183 : vector<16x128xf32>
    %c0_47 = arith.constant 0 : index
    %c0_48 = arith.constant 0 : index
    %185 = vector.load %arg6[%c0_47, %c0_48] : memref<128x4xf32, #tpu.memory_space<vmem>>, vector<128x4xf32>
    %cst_49 = arith.constant dense<0.000000e+00> : vector<16x4xf32>
    %186 = tpu.matmul %184, %185, %cst_49 {dimension_numbers = #tpu.dot_dimension_numbers<[1], [0], [0], [1], [0, 0, 1, 1], [], []>} : vector<16x128xf32>, vector<128x4xf32>, vector<16x4xf32> -> vector<16x4xf32>
    %c0_50 = arith.constant 0 : index
    %c0_51 = arith.constant 0 : index
    %187 = vector.load %arg7[%c0_50, %c0_51] : memref<1x4xf32, #tpu.memory_space<vmem>>, vector<1x4xf32>
    %188 = vector.broadcast %187 : vector<1x4xf32> to vector<16x4xf32>
    %189 = arith.addf %186, %188 : vector<16x4xf32>
    %c0_52 = arith.constant 0 : index
    %c0_53 = arith.constant 0 : index
    %190 = vector.load %arg8[%c0_52, %c0_53] : memref<16x4xf32, #tpu.memory_space<vmem>>, vector<16x4xf32>
    tpu.vector_store %arg8[%c0_52, %c0_53], %189 {strides = array<i32>} : memref<16x4xf32, #tpu.memory_space<vmem>>, vector<16x4xf32>,
    return
  }
}

</mosaic_0001>

<bundles_post_ra>
// kernel: drqn_forward.1
= control target key start
LH: loop header
LB: loop body
LE: loop exit
PB: predicated region body
PF: predicated region fallthrough
CT: control target
= control target key end

     0   :  { %vm40_vm0 = vcmask 130048   ;;  %v1573_v3 = vmov 0.0|0.0   ;;  %vm1574_vm1 = vmmov 0   ;;  %v1575_v4 = vmov 0.0   ;;  %s1576_s20 = smov 64   ;;  %s1851_s1 = inlined_call_operand.vmem [shape: f32[16,128], index: 1, kind: input, shape index: {}]   ;;  %s1852_s0 = inlined_call_operand.vmem [shape: f32[16,16], index: 0, kind: input, shape index: {}]   ;;  %s1853_s2 = inlined_call_operand.vmem [shape: f32[32,128], index: 2, kind: input, shape index: {}]   ;;  %s1854_s3 = inlined_call_operand.vmem [shape: f32[1,128], index: 3, kind: input, shape index: {}]   ;;  %s1855_s4 = inlined_call_operand.vmem [shape: f32[32,128], index: 4, kind: input, shape index: {}]   ;;  %s1856_s6 = inlined_call_operand.vmem [shape: f32[128,4], index: 6, kind: input, shape index: {}]   ;;  %s1857_s5 = inlined_call_operand.vmem [shape: f32[1,128], index: 5, kind: input, shape index: {}]   ;;  %s1858_s7 = inlined_call_operand.vmem [shape: f32[1,4], index: 7, kind: input, shape index: {}]   ;;  %s1859_s8 = inlined_call_operand.vmem [shape: f32[16,4], index: 8, kind: output, shape index: {}]  }
   0x1   :  { %v31_v0 = vld [vmem:[%s1851_s1] sm:$0xff]  ;;  %v32_v1 = vld [vmem:[%s1851_s1 + $0x8] sm:$0xff]  ;;  %1450 = vmatprep.subr.bf16.mxu0 %v1573_v3  ;;  %1335 = vmatprep.mubr.msk.f32.mxu0 %vm1574_vm1, %v1575_v4  ;;  %v124_v10 = vld [vmem:[%s1853_s2 + $0x10] sm:$0xff]  ;;  %vm126_vm2 = vcmask 261120   ;;  %vm977_vm3 = vcmask 1041408   ;;  %vm979_vm4 = vcmask 1043456  }
   0x2   :  { %v29_v2 = vld [vmem:[%s1852_s0] sm:$0xff]  ;;  %v1428_v5 = vpack.c.bf16 %v32_v1, %v31_v0  ;;  %v123_v7 = vld [vmem:[%s1853_s2 + $0x8] sm:$0xff]  ;;  %v125_v11 = vld [vmem:[%s1853_s2 + $0x18] sm:$0xff]  ;;  %vm981_vm5 = vcmask 1045504   ;;  %vm1182_vm6 = vcmask 31744  }
   0x3   :  { %1291 = vmatprep.mubr.msk.f32.mxu1 %vm40_vm0, %v29_v2  ;;  %v122_v6 = vld [vmem:[%s1853_s2] sm:$0xff]  ;;  %v30_v9 = vld [vmem:[%s1852_s0 + $0x8] sm:$0xff]  ;;  %v1657_v12 = vpack.c.bf16 %v125_v11, %v124_v10 }
   0x4   :  { %v1642_v8 = vpack.c.bf16 %v123_v7, %v122_v6  ;;  %1429 = vmatprep.subr.bf16.mxu1 %v1428_v5  ;;  %v1189_v13 = vld [vmem:[%s1854_s3] ss:$0 sm:$0xff]  ;;  %s1577_s3 = smov 32  }
   0x5   :  { %1431 = vmatpush3.bf16.msra.mxu1 %v1428_v5 }
   0x6   :  { %1452 = vmatpush3.bf16.msra.mxu0 %v1642_v8  ;;  %1432 = vmatprep.subr.bf16.mxu1 %v1573_v3 }
   0x7   :  { %1453 = vmatprep.subr.bf16.mxu0 %v1573_v3 }
   0x8   :  { %1292 = vmatmul.mubr.msk.f32.vlgmr.msra.gmra.mrb[0].mxu1 %vm40_vm0, %v30_v9 }
   0x9   :  { %1434 = vmatpush3.bf16.msra.mxu1 %v1642_v8  ;;  %1302 = vmatprep.mubr.msk.f32.mxu1 %vm1574_vm1, %v1575_v4 }
   0xa   :  { %1435 = vmatprep.subr.bf16.mxu1 %v1573_v3  ;;  %1455 = vmatpush3.bf16.msra.mxu0 %v1657_v12 }
   0xb   :  { %1462 = vmatprep.subr.bf16.mxu0 %v1573_v3 }
   0xd   :  { %1437 = vmatpush3.bf16.msra.mxu1 %v1657_v12 }
   0xe   :  { %1438 = vmatprep.subr.bf16.mxu1 %v1573_v3 }
  0x10   :  { %1303 = vmatmul.mubr.f32.vlgmr.msra.gmra.mrb[2].mxu1 %v1575_v4 }
  0x11   :  { %1440 = vmatpush3.bf16.msra.mxu1 %v1642_v8  ;;  %1313 = vmatprep.mubr.msk.f32.mxu1 %vm1574_vm1, %v1575_v4 }
  0x12   :  { %1441 = vmatprep.subr.bf16.mxu1 %v1573_v3 }
  0x15   :  { %1443 = vmatpush3.bf16.msra.mxu1 %v1657_v12 }
  0x16   :  { %1444 = vmatprep.subr.bf16.mxu1 %v1573_v3 }
  0xdb   :  { %v1293_v14 = vpop.f32.mrb[0].mxu1 }
  0xdc   :  { %v1677_v15 = vadd.f32 %v1293_v14, %v1189_v13  ;;  %v113_v16 = vpop.f32.mrb[1].mxu1 }
  0xdd   :  { %v1679_v17 = vadd.f32 %v1189_v13, %v113_v16 }
  0xe3   :  { %v196_v18 = vpop.f32.mrb[2].mxu1 }
  0xe4   :  { %v200_v19 = vadd.f32 %v196_v18, %v1679_v17  ;;  %v1304_v20 = vpop.f32.mrb[3].mxu1 }
  0xe6   :  { %v1192_v21 = vmul.f32 -1.442695, %v200_v19 }
  0xe8   :  { %1525 = vpow2.f32 %v1192_v21 }
  0xf2   :  { %v1526_v22 = vpop.eup %1525 }
  0xf3   :  { %v204_v23 = vadd.f32 1.0, %v1526_v22 }
  0xf5   :  { %1527 = vrcp.f32 %v204_v23 }
  0xff   :  { %v1528_v24 = vpop.eup %1527 }
 0x100   :  { %v207_v25 = vmul.f32 2.0, %v1528_v24  ;;  %v209_v29 = vmul.f32 0.0, %v1528_v24 }
 0x102   :  { %v1193_v26 = vadd.f32 -1.0, %v207_v25 }
 0x104   :  { %211 = vrot.lane.b32.xlu0 %v1193_v26, %s1576_s20 }
 0x176   :  { %v212_v27 = vpop.permute.xlu0 %211 }
 0x177   :  { %v214_v28 = vmul.f32 %v1528_v24, %v212_v27 }
 0x179   :  { %216 = vrot.lane.b32.xlu0 %v214_v28, %s1577_s3 }
 0x1eb   :  { %v217_v30 = vpop.permute.xlu0 %216 }
 0x1ec   :  { %v219_v31 = vadd.f32 %v217_v30, %v209_v29 }
 0x1ee   :  { %1529 = vtanh.f32 %v219_v31  ;;  %v314_v48 = vrot.slane %v219_v31, 6 }
 0x1f8   :  { %v1530_v32 = vpop.eup %1529 }
 0x1f9   :  { %222 = vrot.lane.b32.xlu1 %v1530_v32, %s1576_s20 }
 0x26b   :  { %v223_v33 = vpop.permute.xlu1 %222 }
 0x26c   :  { %v1685_v34 = vmul.f32 %v1528_v24, %v223_v33 }
 0x26e   :  { %227 = vrot.lane.b32.xlu1 %v1685_v34, %s1577_s3 }
 0x2e0   :  { %v228_v35 = vpop.permute.xlu1 %227 }
 0x2e1   :  { %1314 = vmatmul.mubr.msk.f32.vlgmr.msra.gmra.mrb[4].mxu1 %vm126_vm2, %v228_v35 }
 0x2e2   :  { %1446 = vmatpush3.bf16.msra.mxu1 %v1642_v8  ;;  %1324 = vmatprep.mubr.msk.f32.mxu1 %vm1574_vm1, %v1575_v4 }
 0x2e3   :  { %1447 = vmatprep.subr.bf16.mxu1 %v1573_v3 }
 0x2e6   :  { %1449 = vmatpush3.bf16.msra.mxu1 %v1657_v12 }
 0x2e7   :  { %1456 = vmatprep.subr.bf16.mxu1 %v1573_v3 }
 0x3b4   :  { %v297_v36 = vpop.f32.mrb[4].mxu1 }
 0x3b5   :  { %v302_v37 = vrot.slane %v297_v36, 6  ;;  %v1315_v38 = vpop.f32.mrb[5].mxu1 }
 0x3b7   :  { %v304_v39 = vadd.f32 %v302_v37, %v1679_v17 }
 0x3b9   :  { %v1195_v40 = vmul.f32 -1.442695, %v304_v39 }
 0x3bb   :  { %1531 = vpow2.f32 %v1195_v40 }
 0x3c5   :  { %v1532_v41 = vpop.eup %1531 }
 0x3c6   :  { %v308_v42 = vadd.f32 1.0, %v1532_v41 }
 0x3c8   :  { %1533 = vrcp.f32 %v308_v42 }
 0x3d2   :  { %v1534_v43 = vpop.eup %1533 }
 0x3d3   :  { %v311_v44 = vmul.f32 2.0, %v1534_v43  ;;  %v316_v49 = vmul.f32 %v1534_v43, %v314_v48 }
 0x3d5   :  { %v1196_v45 = vadd.f32 -1.0, %v311_v44 }
 0x3d7   :  { %318 = vrot.lane.b32.xlu0 %v1196_v45, %s1576_s20 }
 0x449   :  { %v319_v46 = vpop.permute.xlu0 %318 }
 0x44a   :  { %v321_v47 = vmul.f32 %v1534_v43, %v319_v46 }
 0x44c   :  { %323 = vrot.lane.b32.xlu1 %v321_v47, %s1577_s3 }
 0x4be   :  { %v324_v50 = vpop.permute.xlu1 %323 }
 0x4bf   :  { %v326_v51 = vadd.f32 %v324_v50, %v316_v49 }
 0x4c1   :  { %1535 = vtanh.f32 %v326_v51  ;;  %v422_v7 = vrot.slane %v326_v51, 6 }
 0x4cb   :  { %v1536_v52 = vpop.eup %1535 }
 0x4cc   :  { %329 = vrot.lane.b32.xlu0 %v1536_v52, %s1576_s20 }
 0x53e   :  { %v330_v53 = vpop.permute.xlu0 %329 }
 0x53f   :  { %v332_v54 = vmul.f32 %v1534_v43, %v330_v53 }
 0x541   :  { %v334_v55 = vrot.slane %v332_v54, 2  ;;  %v978_v18 = vsel %vm977_vm3, %v1685_v34, %v332_v54 }
 0x543   :  { %335 = vrot.lane.b32.xlu1 %v334_v55, %s1577_s3 }
 0x5b5   :  { %v336_v56 = vpop.permute.xlu1 %335 }
 0x5b6   :  { %1325 = vmatmul.mubr.msk.f32.vlgmr.msra.gmra.mrb[6].mxu1 %vm126_vm2, %v336_v56 }
 0x5b7   :  { %1458 = vmatpush3.bf16.msra.mxu1 %v1642_v8  ;;  %1346 = vmatprep.mubr.msk.f32.mxu1 %vm1574_vm1, %v1575_v4 }
 0x5b8   :  { %1459 = vmatprep.subr.bf16.mxu1 %v1573_v3 }
 0x5bb   :  { %1461 = vmatpush3.bf16.msra.mxu1 %v1657_v12 }
 0x5bc   :  { %1468 = vmatprep.subr.bf16.mxu1 %v1573_v3 }
 0x689   :  { %v405_v57 = vpop.f32.mrb[6].mxu1 }
 0x68a   :  { %v410_v58 = vrot.slane %v405_v57, 4  ;;  %v1326_v59 = vpop.f32.mrb[7].mxu1 }
 0x68c   :  { %v412_v60 = vadd.f32 %v410_v58, %v1679_v17 }
 0x68e   :  { %v1198_v61 = vmul.f32 -1.442695, %v412_v60 }
 0x690   :  { %1537 = vpow2.f32 %v1198_v61 }
 0x69a   :  { %v1538_v62 = vpop.eup %1537 }
 0x69b   :  { %v416_v63 = vadd.f32 1.0, %v1538_v62 }
 0x69d   :  { %1539 = vrcp.f32 %v416_v63 }
 0x6a7   :  { %v1540_v0 = vpop.eup %1539 }
 0x6a8   :  { %v419_v1 = vmul.f32 2.0, %v1540_v0  ;;  %v424_v9 = vmul.f32 %v1540_v0, %v422_v7 }
 0x6aa   :  { %v1199_v2 = vadd.f32 -1.0, %v419_v1 }
 0x6ac   :  { %426 = vrot.lane.b32.xlu0 %v1199_v2, %s1576_s20 }
 0x71e   :  { %v427_v5 = vpop.permute.xlu0 %426 }
 0x71f   :  { %v429_v6 = vmul.f32 %v1540_v0, %v427_v5 }
 0x721   :  { %431 = vrot.lane.b32.xlu1 %v429_v6, %s1577_s3 }
 0x793   :  { %v432_v10 = vpop.permute.xlu1 %431 }
 0x794   :  { %v434_v11 = vadd.f32 %v432_v10, %v424_v9 }
 0x796   :  { %1541 = vtanh.f32 %v434_v11  ;;  %v530_v34 = vrot.slane %v434_v11, 6 }
 0x7a0   :  { %v1542_v13 = vpop.eup %1541 }
 0x7a1   :  { %437 = vrot.lane.b32.xlu0 %v1542_v13, %s1576_s20 }
 0x813   :  { %v438_v14 = vpop.permute.xlu0 %437 }
 0x814   :  { %v440_v16 = vmul.f32 %v1540_v0, %v438_v14 }
 0x816   :  { %v442_v19 = vrot.slane %v440_v16, 4  ;;  %v980_v20 = vsel %vm979_vm4, %v978_v18, %v440_v16 }
 0x818   :  { %443 = vrot.lane.b32.xlu1 %v442_v19, %s1577_s3 }
 0x88a   :  { %v444_v21 = vpop.permute.xlu1 %443 }
 0x88b   :  { %1336 = vmatmul.mubr.msk.f32.vlgmr.msra.gmra.mrb[0].mxu0 %vm126_vm2, %v444_v21 }
 0x88c   :  { %1464 = vmatpush3.bf16.msra.mxu0 %v1642_v8  ;;  %1357 = vmatprep.mubr.msk.f32.mxu0 %vm1574_vm1, %v1575_v4 }
 0x88d   :  { %1465 = vmatprep.subr.bf16.mxu0 %v1573_v3 }
 0x890   :  { %1467 = vmatpush3.bf16.msra.mxu0 %v1657_v12 }
 0x891   :  { %1474 = vmatprep.subr.bf16.mxu0 %v1573_v3 }
 0x95e   :  { %v513_v22 = vpop.f32.mrb[0].mxu0 }
 0x95f   :  { %v518_v23 = vrot.slane %v513_v22, 2  ;;  %v1337_v24 = vpop.f32.mrb[1].mxu0 }
 0x961   :  { %v520_v25 = vadd.f32 %v518_v23, %v1679_v17 }
 0x963   :  { %v1201_v26 = vmul.f32 -1.442695, %v520_v25 }
 0x965   :  { %1543 = vpow2.f32 %v1201_v26 }
 0x96f   :  { %v1544_v27 = vpop.eup %1543 }
 0x970   :  { %v524_v28 = vadd.f32 1.0, %v1544_v27 }
 0x972   :  { %1545 = vrcp.f32 %v524_v28 }
 0x97c   :  { %v1546_v29 = vpop.eup %1545 }
 0x97d   :  { %v527_v30 = vmul.f32 2.0, %v1546_v29  ;;  %v532_v35 = vmul.f32 %v1546_v29, %v530_v34 }
 0x97f   :  { %v1202_v31 = vadd.f32 -1.0, %v527_v30 }
 0x981   :  { %534 = vrot.lane.b32.xlu0 %v1202_v31, %s1576_s20 }
 0x9f3   :  { %v535_v32 = vpop.permute.xlu0 %534 }
 0x9f4   :  { %v537_v33 = vmul.f32 %v1546_v29, %v535_v32 }
 0x9f6   :  { %539 = vrot.lane.b32.xlu1 %v537_v33, %s1577_s3 }
 0xa68   :  { %v540_v36 = vpop.permute.xlu1 %539 }
 0xa69   :  { %v542_v37 = vadd.f32 %v540_v36, %v532_v35 }
 0xa6b   :  { %1547 = vtanh.f32 %v542_v37  ;;  %v635_v54 = vrot.slane %v542_v37, 6 }
 0xa75   :  { %v1548_v17 = vpop.eup %1547 }
 0xa76   :  { %545 = vrot.lane.b32.xlu0 %v1548_v17, %s1576_s20 }
 0xae8   :  { %v546_v38 = vpop.permute.xlu0 %545 }
 0xae9   :  { %v548_v39 = vmul.f32 %v1546_v29, %v546_v38 }
 0xaeb   :  { %v550_v40 = vrot.slane %v548_v39, 6  ;;  %v1728_v41 = vsel %vm981_vm5, %v980_v20, %v548_v39 }
 0xaed   :  { %551 = vrot.lane.b32.xlu1 %v550_v40, %s1577_s3 }
 0xb5f   :  { %v552_v42 = vpop.permute.xlu1 %551 }
 0xb60   :  { %1347 = vmatmul.mubr.msk.f32.vlgmr.msra.gmra.mrb[8].mxu1 %vm126_vm2, %v552_v42 }
 0xb61   :  { %1470 = vmatpush3.bf16.msra.mxu1 %v1642_v8  ;;  %1368 = vmatprep.mubr.msk.f32.mxu1 %vm1574_vm1, %v1575_v4 }
 0xb62   :  { %1471 = vmatprep.subr.bf16.mxu1 %v1573_v3 }
 0xb65   :  { %1473 = vmatpush3.bf16.msra.mxu1 %v1657_v12 }
 0xc33   :  { %v621_v43 = vpop.f32.mrb[8].mxu1 }
 0xc34   :  { %v625_v44 = vadd.f32 %v621_v43, %v1677_v15  ;;  %v1348_v45 = vpop.f32.mrb[9].mxu1 }
 0xc36   :  { %v1204_v46 = vmul.f32 -1.442695, %v625_v44 }
 0xc38   :  { %1549 = vpow2.f32 %v1204_v46 }
 0xc42   :  { %v1550_v47 = vpop.eup %1549 }
 0xc43   :  { %v629_v48 = vadd.f32 1.0, %v1550_v47 }
 0xc45   :  { %1551 = vrcp.f32 %v629_v48 }
 0xc4f   :  { %v1552_v49 = vpop.eup %1551 }
 0xc50   :  { %v632_v50 = vmul.f32 2.0, %v1552_v49  ;;  %v637_v55 = vmul.f32 %v1552_v49, %v635_v54 }
 0xc52   :  { %v1205_v51 = vadd.f32 -1.0, %v632_v50 }
 0xc54   :  { %639 = vrot.lane.b32.xlu0 %v1205_v51, %s1576_s20 }
 0xcc6   :  { %v640_v52 = vpop.permute.xlu0 %639 }
 0xcc7   :  { %v642_v53 = vmul.f32 %v1552_v49, %v640_v52 }
 0xcc9   :  { %644 = vrot.lane.b32.xlu1 %v642_v53, %s1577_s3 }
 0xd3b   :  { %v645_v56 = vpop.permute.xlu1 %644 }
 0xd3c   :  { %v647_v57 = vadd.f32 %v645_v56, %v637_v55 }
 0xd3e   :  { %1553 = vtanh.f32 %v647_v57 }
 0xd48   :  { %v1554_v58 = vpop.eup %1553 }
 0xd49   :  { %650 = vrot.lane.b32.xlu0 %v1554_v58, %s1576_s20 }
 0xdbb   :  { %v651_v59 = vpop.permute.xlu0 %650 }
 0xdbc   :  { %v1741_v60 = vmul.f32 %v1552_v49, %v651_v59 }
 0xdbe   :  { %655 = vrot.lane.b32.xlu1 %v1741_v60, %s1577_s3 }
 0xe30   :  { %v656_v61 = vpop.permute.xlu1 %655 }
 0xe31   :  { %1358 = vmatmul.mubr.msk.f32.vlgmr.msra.gmra.mrb[2].mxu0 %vm126_vm2, %v656_v61  ;;  %v987_v61 = vld [vmem:[%s1855_s4 + $0x8] sm:$0xff] }
 0xe32   :  { %1476 = vmatpush3.bf16.msra.mxu0 %v1642_v8  ;;  %1379 = vmatprep.mubr.msk.f32.mxu0 %vm1574_vm1, %v1575_v4 }
 0xe33   :  { %1477 = vmatprep.subr.bf16.mxu0 %v1573_v3  ;;  %v742_v3 = vrot.slane %v647_v57, 6 }
 0xe36   :  { %1479 = vmatpush3.bf16.msra.mxu0 %v1657_v12 }
 0xf04   :  { %v725_v62 = vpop.f32.mrb[2].mxu0 }
 0xf05   :  { %v730_v63 = vrot.slane %v725_v62, 6  ;;  %v1359_v0 = vpop.f32.mrb[3].mxu0 }
 0xf07   :  { %v732_v1 = vadd.f32 %v730_v63, %v1677_v15  ;;  %v989_v63 = vld [vmem:[%s1855_s4 + $0x18] sm:$0xff] }
 0xf09   :  { %v1207_v2 = vmul.f32 -1.442695, %v732_v1 }
 0xf0b   :  { %1555 = vpow2.f32 %v1207_v2  ;;  %v1084_v2 = vld [vmem:[%s1856_s6] sm:$0xff] }
 0xf15   :  { %v1556_v5 = vpop.eup %1555 }
 0xf16   :  { %v736_v6 = vadd.f32 1.0, %v1556_v5  ;;  %v1085_v5 = vld [vmem:[%s1856_s6 + $0x8] sm:$0xff] }
 0xf18   :  { %1557 = vrcp.f32 %v736_v6  ;;  %v1086_v6 = vld [vmem:[%s1856_s6 + $0x10] sm:$0xff] }
 0xf22   :  { %v1558_v7 = vpop.eup %1557 }
 0xf23   :  { %v739_v9 = vmul.f32 2.0, %v1558_v7  ;;  %v744_v12 = vmul.f32 %v1558_v7, %v742_v3 }
 0xf25   :  { %v1208_v8 = vadd.f32 -1.0, %v739_v9  ;;  %v1087_v9 = vld [vmem:[%s1856_s6 + $0x18] sm:$0xff] }
 0xf27   :  { %746 = vrot.lane.b32.xlu0 %v1208_v8, %s1576_s20  ;;  %v1492_v8 = vpack.c.bf16 %v1087_v9, %v1086_v6 }
 0xf99   :  { %v747_v4 = vpop.permute.xlu0 %746 }
 0xf9a   :  { %v749_v10 = vmul.f32 %v1558_v7, %v747_v4  ;;  %v1088_v4 = vld [vmem:[%s1856_s6 + $0x20] sm:$0xff] }
 0xf9c   :  { %751 = vrot.lane.b32.xlu1 %v749_v10, %s1577_s3  ;;  %v1089_v10 = vld [vmem:[%s1856_s6 + $0x28] sm:$0xff] }
 0xf9d   :  { %v1496_v3 = vpack.c.bf16 %v1089_v10, %v1088_v4 }
0x100e   :  { %v752_v11 = vpop.permute.xlu1 %751 }
0x100f   :  { %v754_v13 = vadd.f32 %v752_v11, %v744_v12  ;;  %v1090_v12 = vld [vmem:[%s1856_s6 + $0x30] sm:$0xff]  ;;  %v1091_v11 = vld [vmem:[%s1856_s6 + $0x38] sm:$0xff] }
0x1011   :  { %1559 = vtanh.f32 %v754_v13  ;;  %v850_v33 = vrot.slane %v754_v13, 6 }
0x101b   :  { %v1560_v14 = vpop.eup %1559 }
0x101c   :  { %757 = vrot.lane.b32.xlu0 %v1560_v14, %s1576_s20 }
0x108e   :  { %v758_v16 = vpop.permute.xlu0 %757 }
0x108f   :  { %v760_v18 = vmul.f32 %v1558_v7, %v758_v16  ;;  %v1488_v7 = vpack.c.bf16 %v1085_v5, %v1084_v2  ;;  %v1500_v16 = vpack.c.bf16 %v1091_v11, %v1090_v12 }
0x1091   :  { %v762_v19 = vrot.slane %v760_v18, 2  ;;  %v983_v39 = vsel %vm977_vm3, %v1741_v60, %v760_v18  ;;  %v986_v60 = vld [vmem:[%s1855_s4] sm:$0xff]  ;;  %1489 = vmatprep.subr.bf16.mxu0 %v1488_v7 }
0x1092   :  { %v1480_v62 = vpack.c.bf16 %v987_v61, %v986_v60  ;;  %v1092_v18 = vld [vmem:[%s1856_s6 + $0x40] sm:$0xff] }
0x1093   :  { %763 = vrot.lane.b32.xlu1 %v762_v19, %s1577_s3  ;;  %v1093_v19 = vld [vmem:[%s1856_s6 + $0x48] sm:$0xff] }
0x1094   :  { %1481 = vmatprep.subr.bf16.mxu1 %v1480_v62 }
0x1105   :  { %v764_v20 = vpop.permute.xlu1 %763 }
0x1106   :  { %1369 = vmatmul.mubr.msk.f32.vlgmr.msra.gmra.mrb[10].mxu1 %vm126_vm2, %v764_v20 }
0x1107   :  { %1483 = vmatpush3.bf16.msra.mxu1 %v1480_v62 }
0x11d9   :  { %v833_v21 = vpop.f32.mrb[10].mxu1 }
0x11da   :  { %v838_v22 = vrot.slane %v833_v21, 4  ;;  %v1370_v23 = vpop.f32.mrb[11].mxu1  ;;  %v1504_v21 = vpack.c.bf16 %v1093_v19, %v1092_v18 }
0x11db   :  { %v1095_v23 = vld [vmem:[%s1856_s6 + $0x58] sm:$0xff] }
0x11dc   :  { %v840_v24 = vadd.f32 %v838_v22, %v1677_v15  ;;  %v1094_v22 = vld [vmem:[%s1856_s6 + $0x50] sm:$0xff] }
0x11de   :  { %v1210_v25 = vmul.f32 -1.442695, %v840_v24  ;;  %v1508_v24 = vpack.c.bf16 %v1095_v23, %v1094_v22 }
0x11e0   :  { %1561 = vpow2.f32 %v1210_v25  ;;  %v1096_v25 = vld [vmem:[%s1856_s6 + $0x60] sm:$0xff] }
0x11ea   :  { %v1562_v26 = vpop.eup %1561 }
0x11eb   :  { %v844_v27 = vadd.f32 1.0, %v1562_v26  ;;  %v1097_v26 = vld [vmem:[%s1856_s6 + $0x68] sm:$0xff] }
0x11ed   :  { %1563 = vrcp.f32 %v844_v27  ;;  %v1512_v27 = vpack.c.bf16 %v1097_v26, %v1096_v25 }
0x11f7   :  { %v1564_v28 = vpop.eup %1563 }
0x11f8   :  { %v847_v29 = vmul.f32 2.0, %v1564_v28  ;;  %v852_v34 = vmul.f32 %v1564_v28, %v850_v33 }
0x11fa   :  { %v1211_v30 = vadd.f32 -1.0, %v847_v29  ;;  %v1098_v29 = vld [vmem:[%s1856_s6 + $0x70] sm:$0xff] }
0x11fc   :  { %854 = vrot.lane.b32.xlu0 %v1211_v30, %s1576_s20  ;;  %v1099_v30 = vld [vmem:[%s1856_s6 + $0x78] sm:$0xff] }
0x126e   :  { %v855_v31 = vpop.permute.xlu0 %854 }
0x126f   :  { %v857_v32 = vmul.f32 %v1564_v28, %v855_v31  ;;  %v1516_v31 = vpack.c.bf16 %v1099_v30, %v1098_v29 }
0x1271   :  { %859 = vrot.lane.b32.xlu1 %v857_v32, %s1577_s3  ;;  %v1215_v32 = vld [vmem:[%s1857_s5] ss:$0 sm:$0xff] }
0x12e3   :  { %v860_v35 = vpop.permute.xlu1 %859 }
0x12e4   :  { %v862_v36 = vadd.f32 %v860_v35, %v852_v34 }
0x12e6   :  { %1565 = vtanh.f32 %v862_v36  ;;  %v958_v56 = vrot.slane %v862_v36, 6 }
0x12f0   :  { %v1566_v37 = vpop.eup %1565 }
0x12f1   :  { %865 = vrot.lane.b32.xlu0 %v1566_v37, %s1576_s20 }
0x1363   :  { %v866_v17 = vpop.permute.xlu0 %865 }
0x1364   :  { %v868_v38 = vmul.f32 %v1564_v28, %v866_v17 }
0x1366   :  { %v870_v40 = vrot.slane %v868_v38, 4  ;;  %v1764_v42 = vsel %vm979_vm4, %v983_v39, %v868_v38  ;;  %v1218_v38 = vld [vmem:[%s1858_s7] ss:$0 sm:$0xff] }
0x1368   :  { %871 = vrot.lane.b32.xlu1 %v870_v40, %s1577_s3 }
0x13da   :  { %v872_v43 = vpop.permute.xlu1 %871 }
0x13db   :  { %1380 = vmatmul.mubr.msk.f32.vlgmr.msra.gmra.mrb[4].mxu0 %vm126_vm2, %v872_v43 }
0x13dc   :  { %1491 = vmatpush3.bf16.msra.mxu0 %v1488_v7 }
0x13dd   :  { %1493 = vmatprep.subr.bf16.mxu0 %v1492_v8 }
0x13e0   :  { %1495 = vmatpush3.bf16.msra.mxu0 %v1492_v8 }
0x13e1   :  { %1497 = vmatprep.subr.bf16.mxu0 %v1496_v3 }
0x13e4   :  { %1499 = vmatpush3.bf16.msra.mxu0 %v1496_v3 }
0x13e5   :  { %1501 = vmatprep.subr.bf16.mxu0 %v1500_v16 }
0x13e8   :  { %1503 = vmatpush3.bf16.msra.mxu0 %v1500_v16 }
0x13e9   :  { %1505 = vmatprep.subr.bf16.mxu0 %v1504_v21 }
0x13ec   :  { %1507 = vmatpush3.bf16.msra.mxu0 %v1504_v21 }
0x13ed   :  { %1509 = vmatprep.subr.bf16.mxu0 %v1508_v24 }
0x13f0   :  { %1511 = vmatpush3.bf16.msra.mxu0 %v1508_v24 }
0x13f1   :  { %1513 = vmatprep.subr.bf16.mxu0 %v1512_v27 }
0x13f4   :  { %1515 = vmatpush3.bf16.msra.mxu0 %v1512_v27 }
0x13f5   :  { %1517 = vmatprep.subr.bf16.mxu0 %v1516_v31 }
0x13f8   :  { %1519 = vmatpush3.bf16.msra.mxu0 %v1516_v31 }
0x14ae   :  { %v941_v44 = vpop.f32.mrb[4].mxu0 }
0x14af   :  { %v946_v45 = vrot.slane %v941_v44, 2  ;;  %v1381_v46 = vpop.f32.mrb[5].mxu0 }
0x14b1   :  { %v948_v47 = vadd.f32 %v946_v45, %v1677_v15 }
0x14b3   :  { %v1213_v48 = vmul.f32 -1.442695, %v948_v47 }
0x14b5   :  { %1567 = vpow2.f32 %v1213_v48 }
0x14bf   :  { %v1568_v49 = vpop.eup %1567 }
0x14c0   :  { %v952_v50 = vadd.f32 1.0, %v1568_v49 }
0x14c2   :  { %1569 = vrcp.f32 %v952_v50 }
0x14cc   :  { %v1570_v51 = vpop.eup %1569 }
0x14cd   :  { %v955_v52 = vmul.f32 2.0, %v1570_v51  ;;  %v960_v57 = vmul.f32 %v1570_v51, %v958_v56 }
0x14cf   :  { %v1214_v53 = vadd.f32 -1.0, %v955_v52 }
0x14d1   :  { %962 = vrot.lane.b32.xlu0 %v1214_v53, %s1576_s20 }
0x1543   :  { %v963_v54 = vpop.permute.xlu0 %962 }
0x1544   :  { %v965_v55 = vmul.f32 %v1570_v51, %v963_v54 }
0x1546   :  { %967 = vrot.lane.b32.xlu1 %v965_v55, %s1577_s3 }
0x154a   :  { %999 = vrot.lane.b32.xlu1 %v1728_v41, %s1577_s3  ;;  %v988_v41 = vld [vmem:[%s1855_s4 + $0x10] sm:$0xff] }
0x154b   :  { %v1484_v0 = vpack.c.bf16 %v989_v63, %v988_v41 }
0x154d   :  { %1485 = vmatprep.subr.bf16.mxu1 %v1484_v0 }
0x154e   :  { %1487 = vmatpush3.bf16.msra.mxu1 %v1484_v0 }
0x15b8   :  { %v968_v15 = vpop.permute.xlu1 %967 }
0x15b9   :  { %v970_v58 = vadd.f32 %v968_v15, %v960_v57 }
0x15bb   :  { %1571 = vtanh.f32 %v970_v58 }
0x15bc   :  { %v1000_v59 = vpop.permute.xlu1 %999 }
0x15bd   :  { %1390 = vmatprep.mubr.msk.f32.mxu1 %vm126_vm2, %v1000_v59 }
0x15c5   :  { %v1572_v1 = vpop.eup %1571 }
0x15c6   :  { %973 = vrot.lane.b32.xlu0 %v1572_v1, %s1576_s20 }
0x1638   :  { %v974_v13 = vpop.permute.xlu0 %973 }
0x1639   :  { %v976_v14 = vmul.f32 %v1570_v51, %v974_v13 }
0x163b   :  { %v985_v20 = vsel %vm981_vm5, %v1764_v42, %v976_v14 }
0x163c   :  { %1001 = vrot.lane.b32.xlu0 %v985_v20, %s1577_s3 }
0x16ae   :  { %v1002_v28 = vpop.permute.xlu0 %1001 }
0x16af   :  { %1391 = vmatmul.mubr.msk.f32.vlgmr.msra.gmra.mrb[12].mxu1 %vm126_vm2, %v1002_v28 }
0x1782   :  { %v1392_v33 = vpop.f32.mrb[12].mxu1 }
0x1783   :  { %v1079_v34 = vadd.f32 %v1392_v33, %v1215_v32  ;;  %v1073_v35 = vpop.f32.mrb[13].mxu1 }
0x1784   :  { %v1074_v36 = vadd.f32 %v1215_v32, %v1073_v35 }
0x1785   :  { %v1083_v17 = vmax.f32 %v1079_v34, 0.0 }
0x1786   :  { %v1082_v37 = vmax.f32 %v1074_v36, 0.0 }
0x1788   :  { %1425 = vmatprep.mubr.f32.mxu0 %v1082_v37 }
0x1789   :  { %1426 = vmatmul.mubr.f32.vlgmr.msra.gmra.mrb[6].mxu0 %v1083_v17 }
0x185c   :  { %v1427_v39 = vpop.f32.mrb[6].mxu0 }
0x185d   :  { %v1179_v40 = vadd.f32 %v1427_v39, %v1218_v38  ;;  %v1173_v42 = vpop.f32.mrb[7].mxu0 }
0x185e   :  { %v1174_v43 = vadd.f32 %v1218_v38, %v1173_v42 }
0x185f   :  { %1184 = vst.msk [vmem:[%s1859_s8 + $0x8] sm:$0xff] %vm1182_vm6, %v1179_v40 }
0x1860   :  { %1183 = vst.msk [vmem:[%s1859_s8] sm:$0xff] %vm1182_vm6, %v1174_v43 }

</bundles_post_ra>
